<compile_context>
chip_gen: v7x
topology: tpu7x:2x2x1
jax: 0.10.0
libtpu: 0.0.40
codegen_flags: <defaults>
</compile_context>

<pallas_src>
import math
import functools

import jax
import jax.numpy as jnp
from jax import lax
from jax.experimental import pallas as pl
from jax.experimental.pallas import tpu as pltpu


# ----------------------------- fused kernel -----------------------------

def _attention_fused_kernel(x_ref, wqkv_ref, wout_ref, bout_ref, o_ref,
                            q_scr, k_scr, v_scr, attn_scr,
                            *, heads, dim_head):
    inner = heads * dim_head

    x = x_ref[0]                                      # (N, dim) f32, resident

    # --- QKV projection: one large MXU matmul, bf16 inputs, f32 accumulation.
    #     (softmax scale already folded into the Q columns of wqkv)
    qkv = jnp.dot(x.astype(jnp.bfloat16), wqkv_ref[...],
                  preferred_element_type=jnp.float32)  # (N, 3*inner) f32
    qkv = qkv.astype(jnp.bfloat16)                     # single cast; feeds MXU twice

    # --- Repack (N, 3*inner) -> three (H, N, d) slabs through VMEM scratch.
    #     Static lane slices + plain stores only; the loop moves data, keeps no
    #     large intermediates live (so static unroll is safe for live ranges).
    for h in range(heads):
        lo = h * dim_head
        q_scr[h] = qkv[:, lo:lo + dim_head]
        k_scr[h] = qkv[:, inner + lo:inner + lo + dim_head]
        v_scr[h] = qkv[:, 2 * inner + lo:2 * inner + lo + dim_head]

    q = q_scr[...]                                     # (H, N, d) bf16
    k = k_scr[...]
    v = v_scr[...]

    # --- Scores for ALL heads in one batched dot_general: contract d, batch H.
    s = lax.dot_general(q, k, (((2,), (2,)), ((0,), (0,))),
                        preferred_element_type=jnp.float32)   # (H, N, N) f32

    # --- Numerically-stable softmax in f32; EUP approx reciprocal for denom.
    s = s - jnp.max(s, axis=-1, keepdims=True)
    p = jnp.exp(s)
    p = p * pl.reciprocal(jnp.sum(p, axis=-1, keepdims=True), approx=True)

    # --- PV for ALL heads in one batched dot_general: contract N, batch H.
    o = lax.dot_general(p.astype(jnp.bfloat16), v, (((2,), (1,)), ((0,), (0,))),
                        preferred_element_type=jnp.float32)   # (H, N, d) f32
    o_b = o.astype(jnp.bfloat16)

    # --- Assemble the lane-dense (N, inner) slab (replaces jnp.concatenate).
    for h in range(heads):
        attn_scr[:, h * dim_head:(h + 1) * dim_head] = o_b[h]

    # --- Output projection (Linear with bias); Dropout(0.0) is identity.
    out = jnp.dot(attn_scr[...], wout_ref[...],
                  preferred_element_type=jnp.float32) + bout_ref[...]   # (N, dim)
    o_ref[0] = out.astype(o_ref.dtype)


# ----------------------------- module wrapper -----------------------------

def attention_forward(x, params, heads, dim_head):
    """Equivalent of Attention.forward. x: (B, N, dim) -> (B, N, dim)."""
    B, N, dim = x.shape
    inner = heads * dim_head
    scale = dim_head ** (-0.5)

    # One-time parameter transforms (zero per-call cost):
    #  * fold the softmax scale into the Q columns of W_qkv,
    #  * pre-cast the MXU weight operands to bf16 (halves weight DMA bytes,
    #    removes per-grid-step VPU casts of resident weight blocks).
    w_qkv = params["w_qkv"].astype(jnp.float32)
    w_qkv = w_qkv.at[:, :inner].multiply(scale).astype(jnp.bfloat16)   # (dim, 3*inner)
    w_out = params["w_out"].astype(jnp.bfloat16)                       # (inner, dim)
    b_out = params["b_out"].reshape(1, dim).astype(jnp.float32)        # (1, dim)

    kern = functools.partial(_attention_fused_kernel,
                             heads=heads, dim_head=dim_head)

    return pl.pallas_call(
        kern,
        out_shape=jax.ShapeDtypeStruct((B, N, dim), x.dtype),
        grid=(B,),
        in_specs=[
            pl.BlockSpec((1, N, dim), lambda b: (b, 0, 0)),        # x (per-batch tile)
            pl.BlockSpec((dim, 3 * inner), lambda b: (0, 0)),      # W_qkv (resident, bf16)
            pl.BlockSpec((inner, dim), lambda b: (0, 0)),          # W_out (resident, bf16)
            pl.BlockSpec((1, dim), lambda b: (0, 0)),              # b_out (resident)
        ],
        out_specs=pl.BlockSpec((1, N, dim), lambda b: (b, 0, 0)),
        scratch_shapes=[
            pltpu.VMEM((heads, N, dim_head), jnp.bfloat16),        # q  (H, N, d)
            pltpu.VMEM((heads, N, dim_head), jnp.bfloat16),        # k  (H, N, d)
            pltpu.VMEM((heads, N, dim_head), jnp.bfloat16),        # v  (H, N, d)
            pltpu.VMEM((N, inner), jnp.bfloat16),                  # attn-out slab
        ],
        compiler_params=pltpu.CompilerParams(
            dimension_semantics=("parallel",),   # shards batch across TCs on v7x
        ),
    )(x, w_qkv, w_out, b_out)


def init_params(key, dim, heads, dim_head):
    inner = heads * dim_head
    k1, k2, k3 = jax.random.split(key, 3)
    # Deterministic synthetic weights (Kaiming-uniform-ish scale like nn.Linear).
    w_qkv = jax.random.uniform(
        k1, (dim, 3 * inner), jnp.float32,
        minval=-1.0 / math.sqrt(dim), maxval=1.0 / math.sqrt(dim))
    w_out = jax.random.uniform(
        k2, (inner, dim), jnp.float32,
        minval=-1.0 / math.sqrt(inner), maxval=1.0 / math.sqrt(inner))
    b_out = jax.random.uniform(
        k3, (dim,), jnp.float32,
        minval=-1.0 / math.sqrt(inner), maxval=1.0 / math.sqrt(inner))
    return {"w_qkv": w_qkv, "w_out": w_out, "b_out": b_out}


# ------------------------------ reference ------------------------------

def attention_reference(x, params, heads, dim_head):
    B, N, dim = x.shape
    inner = heads * dim_head
    w_qkv, w_out, b_out = params["w_qkv"], params["w_out"], params["b_out"]
    qkv = x @ w_qkv
    q, k, v = jnp.split(qkv, 3, axis=-1)
    rs = lambda t: t.reshape(B, N, heads, dim_head).transpose(0, 2, 1, 3)
    q, k, v = map(rs, (q, k, v))
    dots = jnp.einsum("bhnd,bhmd->bhnm", q, k) * (dim_head ** -0.5)
    attn = jax.nn.softmax(dots, axis=-1)
    out = jnp.einsum("bhnm,bhmd->bhnd", attn, v)
    out = out.transpose(0, 2, 1, 3).reshape(B, N, inner)
    return out @ w_out + b_out


# -------------------------------- main ---------------------------------

if __name__ == "__main__":
    B, N, dim = 2, 8, 32
    heads, dim_head = 4, 8      # inner_dim = 32, project_out = True

    key = jax.random.PRNGKey(0)
    kx, kp = jax.random.split(key)
    x = jax.random.normal(kx, (B, N, dim), jnp.float32)
    params = init_params(kp, dim, heads, dim_head)

    out = attention_forward(x, params, heads, dim_head)
    out = jax.block_until_ready(out)

    ref = attention_reference(x, params, heads, dim_head)
    assert out.shape == (B, N, dim)
    # Tolerance relaxed vs. the f32 reference because MXU inputs (x, weights,
    # q/k/v, probabilities) are bf16 with f32 accumulation and the softmax
    # denominator uses the EUP approx reciprocal; softmax itself is f32.
    assert jnp.allclose(out, ref, atol=2e-2, rtol=2e-2), "mismatch vs reference"

    print("KERNEL_OK")
</pallas_src>

<mosaic_0001>
module attributes {stable_mosaic.version = 11 : i64} {
  func.func @_attention_fused_kernel(%arg0: i32, %arg1: memref<1x8x32xf32, #tpu.memory_space<vmem>>, %arg2: memref<32x96xbf16, #tpu.memory_space<vmem>>, %arg3: memref<32x32xbf16, #tpu.memory_space<vmem>>, %arg4: memref<1x32xf32, #tpu.memory_space<vmem>>, %arg5: memref<1x8x32xf32, #tpu.memory_space<vmem>>, %arg6: memref<4x8x8xbf16, #tpu.memory_space<vmem>>, %arg7: memref<4x8x8xbf16, #tpu.memory_space<vmem>>, %arg8: memref<4x8x8xbf16, #tpu.memory_space<vmem>>, %arg9: memref<8x32xbf16, #tpu.memory_space<vmem>>) attributes {dimension_semantics = [#tpu.dimension_semantics<parallel>], iteration_bounds = array<i64: 2>, scalar_prefetch = 0 : i64, scratch_operands = 4 : i64, tpu.core_type = #tpu.core_type<tc>, window_params = [{transform_indices = @transform_0, window_bounds = array<i64: 1, 8, 32>}, {pipeline_mode = #tpu.pipeline_mode<synchronous>, transform_indices = @transform_1, window_bounds = array<i64: 32, 96>}, {pipeline_mode = #tpu.pipeline_mode<synchronous>, transform_indices = @transform_2, window_bounds = array<i64: 32, 32>}, {pipeline_mode = #tpu.pipeline_mode<synchronous>, transform_indices = @transform_3, window_bounds = array<i64: 1, 32>}, {transform_indices = @transform_4, window_bounds = array<i64: 1, 8, 32>}]} {
    %c0 = arith.constant 0 : index
    %c0_0 = arith.constant 0 : index
    %c0_1 = arith.constant 0 : index
    %0 = vector.load %arg1[%c0, %c0_0, %c0_1] : memref<1x8x32xf32, #tpu.memory_space<vmem>>, vector<1x8x32xf32>
    %1 = vector.shape_cast %0 : vector<1x8x32xf32> to vector<8x32xf32>
    %2 = arith.truncf %1 : vector<8x32xf32> to vector<8x32xbf16>
    %c0_2 = arith.constant 0 : index
    %c0_3 = arith.constant 0 : index
    %3 = vector.load %arg2[%c0_2, %c0_3] : memref<32x96xbf16, #tpu.memory_space<vmem>>, vector<32x96xbf16>
    %cst = arith.constant dense<0.000000e+00> : vector<8x96xf32>
    %4 = tpu.matmul %2, %3, %cst {dimension_numbers = #tpu.dot_dimension_numbers<[1], [0], [0], [1], [0, 0, 1, 1], [], []>} : vector<8x32xbf16>, vector<32x96xbf16>, vector<8x96xf32> -> vector<8x96xf32>
    %5 = arith.truncf %4 : vector<8x96xf32> to vector<8x96xbf16>
    %6 = vector.extract_strided_slice %5 {offsets = [0, 0], sizes = [8, 8], strides = [1, 1]} : vector<8x96xbf16> to vector<8x8xbf16>
    %c0_4 = arith.constant 0 : index
    %c0_5 = arith.constant 0 : index
    %c0_6 = arith.constant 0 : index
    %7 = vector.load %arg6[%c0_4, %c0_5, %c0_6] : memref<4x8x8xbf16, #tpu.memory_space<vmem>>, vector<1x8x8xbf16>
    %8 = vector.shape_cast %7 : vector<1x8x8xbf16> to vector<8x8xbf16>
    %9 = vector.shape_cast %6 : vector<8x8xbf16> to vector<1x8x8xbf16>
    tpu.vector_store %arg6[%c0_4, %c0_5, %c0_6], %9 {strides = array<i32>} : memref<4x8x8xbf16, #tpu.memory_space<vmem>>, vector<1x8x8xbf16>,
    %10 = vector.extract_strided_slice %5 {offsets = [0, 32], sizes = [8, 8], strides = [1, 1]} : vector<8x96xbf16> to vector<8x8xbf16>
    %c0_7 = arith.constant 0 : index
    %c0_8 = arith.constant 0 : index
    %c0_9 = arith.constant 0 : index
    %11 = vector.load %arg7[%c0_7, %c0_8, %c0_9] : memref<4x8x8xbf16, #tpu.memory_space<vmem>>, vector<1x8x8xbf16>
    %12 = vector.shape_cast %11 : vector<1x8x8xbf16> to vector<8x8xbf16>
    %13 = vector.shape_cast %10 : vector<8x8xbf16> to vector<1x8x8xbf16>
    tpu.vector_store %arg7[%c0_7, %c0_8, %c0_9], %13 {strides = array<i32>} : memref<4x8x8xbf16, #tpu.memory_space<vmem>>, vector<1x8x8xbf16>,
    %14 = vector.extract_strided_slice %5 {offsets = [0, 64], sizes = [8, 8], strides = [1, 1]} : vector<8x96xbf16> to vector<8x8xbf16>
    %c0_10 = arith.constant 0 : index
    %c0_11 = arith.constant 0 : index
    %c0_12 = arith.constant 0 : index
    %15 = vector.load %arg8[%c0_10, %c0_11, %c0_12] : memref<4x8x8xbf16, #tpu.memory_space<vmem>>, vector<1x8x8xbf16>
    %16 = vector.shape_cast %15 : vector<1x8x8xbf16> to vector<8x8xbf16>
    %17 = vector.shape_cast %14 : vector<8x8xbf16> to vector<1x8x8xbf16>
    tpu.vector_store %arg8[%c0_10, %c0_11, %c0_12], %17 {strides = array<i32>} : memref<4x8x8xbf16, #tpu.memory_space<vmem>>, vector<1x8x8xbf16>,
    %18 = vector.extract_strided_slice %5 {offsets = [0, 8], sizes = [8, 8], strides = [1, 1]} : vector<8x96xbf16> to vector<8x8xbf16>
    %c1 = arith.constant 1 : index
    %c0_13 = arith.constant 0 : index
    %c0_14 = arith.constant 0 : index
    %19 = vector.load %arg6[%c1, %c0_13, %c0_14] : memref<4x8x8xbf16, #tpu.memory_space<vmem>>, vector<1x8x8xbf16>
    %20 = vector.shape_cast %19 : vector<1x8x8xbf16> to vector<8x8xbf16>
    %21 = vector.shape_cast %18 : vector<8x8xbf16> to vector<1x8x8xbf16>
    tpu.vector_store %arg6[%c1, %c0_13, %c0_14], %21 {strides = array<i32>} : memref<4x8x8xbf16, #tpu.memory_space<vmem>>, vector<1x8x8xbf16>,
    %22 = vector.extract_strided_slice %5 {offsets = [0, 40], sizes = [8, 8], strides = [1, 1]} : vector<8x96xbf16> to vector<8x8xbf16>
    %c1_15 = arith.constant 1 : index
    %c0_16 = arith.constant 0 : index
    %c0_17 = arith.constant 0 : index
    %23 = vector.load %arg7[%c1_15, %c0_16, %c0_17] : memref<4x8x8xbf16, #tpu.memory_space<vmem>>, vector<1x8x8xbf16>
    %24 = vector.shape_cast %23 : vector<1x8x8xbf16> to vector<8x8xbf16>
    %25 = vector.shape_cast %22 : vector<8x8xbf16> to vector<1x8x8xbf16>
    tpu.vector_store %arg7[%c1_15, %c0_16, %c0_17], %25 {strides = array<i32>} : memref<4x8x8xbf16, #tpu.memory_space<vmem>>, vector<1x8x8xbf16>,
    %26 = vector.extract_strided_slice %5 {offsets = [0, 72], sizes = [8, 8], strides = [1, 1]} : vector<8x96xbf16> to vector<8x8xbf16>
    %c1_18 = arith.constant 1 : index
    %c0_19 = arith.constant 0 : index
    %c0_20 = arith.constant 0 : index
    %27 = vector.load %arg8[%c1_18, %c0_19, %c0_20] : memref<4x8x8xbf16, #tpu.memory_space<vmem>>, vector<1x8x8xbf16>
    %28 = vector.shape_cast %27 : vector<1x8x8xbf16> to vector<8x8xbf16>
    %29 = vector.shape_cast %26 : vector<8x8xbf16> to vector<1x8x8xbf16>
    tpu.vector_store %arg8[%c1_18, %c0_19, %c0_20], %29 {strides = array<i32>} : memref<4x8x8xbf16, #tpu.memory_space<vmem>>, vector<1x8x8xbf16>,
    %30 = vector.extract_strided_slice %5 {offsets = [0, 16], sizes = [8, 8], strides = [1, 1]} : vector<8x96xbf16> to vector<8x8xbf16>
    %c2 = arith.constant 2 : index
    %c0_21 = arith.constant 0 : index
    %c0_22 = arith.constant 0 : index
    %31 = vector.load %arg6[%c2, %c0_21, %c0_22] : memref<4x8x8xbf16, #tpu.memory_space<vmem>>, vector<1x8x8xbf16>
    %32 = vector.shape_cast %31 : vector<1x8x8xbf16> to vector<8x8xbf16>
    %33 = vector.shape_cast %30 : vector<8x8xbf16> to vector<1x8x8xbf16>
    tpu.vector_store %arg6[%c2, %c0_21, %c0_22], %33 {strides = array<i32>} : memref<4x8x8xbf16, #tpu.memory_space<vmem>>, vector<1x8x8xbf16>,
    %34 = vector.extract_strided_slice %5 {offsets = [0, 48], sizes = [8, 8], strides = [1, 1]} : vector<8x96xbf16> to vector<8x8xbf16>
    %c2_23 = arith.constant 2 : index
    %c0_24 = arith.constant 0 : index
    %c0_25 = arith.constant 0 : index
    %35 = vector.load %arg7[%c2_23, %c0_24, %c0_25] : memref<4x8x8xbf16, #tpu.memory_space<vmem>>, vector<1x8x8xbf16>
    %36 = vector.shape_cast %35 : vector<1x8x8xbf16> to vector<8x8xbf16>
    %37 = vector.shape_cast %34 : vector<8x8xbf16> to vector<1x8x8xbf16>
    tpu.vector_store %arg7[%c2_23, %c0_24, %c0_25], %37 {strides = array<i32>} : memref<4x8x8xbf16, #tpu.memory_space<vmem>>, vector<1x8x8xbf16>,
    %38 = vector.extract_strided_slice %5 {offsets = [0, 80], sizes = [8, 8], strides = [1, 1]} : vector<8x96xbf16> to vector<8x8xbf16>
    %c2_26 = arith.constant 2 : index
    %c0_27 = arith.constant 0 : index
    %c0_28 = arith.constant 0 : index
    %39 = vector.load %arg8[%c2_26, %c0_27, %c0_28] : memref<4x8x8xbf16, #tpu.memory_space<vmem>>, vector<1x8x8xbf16>
    %40 = vector.shape_cast %39 : vector<1x8x8xbf16> to vector<8x8xbf16>
    %41 = vector.shape_cast %38 : vector<8x8xbf16> to vector<1x8x8xbf16>
    tpu.vector_store %arg8[%c2_26, %c0_27, %c0_28], %41 {strides = array<i32>} : memref<4x8x8xbf16, #tpu.memory_space<vmem>>, vector<1x8x8xbf16>,
    %42 = vector.extract_strided_slice %5 {offsets = [0, 24], sizes = [8, 8], strides = [1, 1]} : vector<8x96xbf16> to vector<8x8xbf16>
    %c3 = arith.constant 3 : index
    %c0_29 = arith.constant 0 : index
    %c0_30 = arith.constant 0 : index
    %43 = vector.load %arg6[%c3, %c0_29, %c0_30] : memref<4x8x8xbf16, #tpu.memory_space<vmem>>, vector<1x8x8xbf16>
    %44 = vector.shape_cast %43 : vector<1x8x8xbf16> to vector<8x8xbf16>
    %45 = vector.shape_cast %42 : vector<8x8xbf16> to vector<1x8x8xbf16>
    tpu.vector_store %arg6[%c3, %c0_29, %c0_30], %45 {strides = array<i32>} : memref<4x8x8xbf16, #tpu.memory_space<vmem>>, vector<1x8x8xbf16>,
    %46 = vector.extract_strided_slice %5 {offsets = [0, 56], sizes = [8, 8], strides = [1, 1]} : vector<8x96xbf16> to vector<8x8xbf16>
    %c3_31 = arith.constant 3 : index
    %c0_32 = arith.constant 0 : index
    %c0_33 = arith.constant 0 : index
    %47 = vector.load %arg7[%c3_31, %c0_32, %c0_33] : memref<4x8x8xbf16, #tpu.memory_space<vmem>>, vector<1x8x8xbf16>
    %48 = vector.shape_cast %47 : vector<1x8x8xbf16> to vector<8x8xbf16>
    %49 = vector.shape_cast %46 : vector<8x8xbf16> to vector<1x8x8xbf16>
    tpu.vector_store %arg7[%c3_31, %c0_32, %c0_33], %49 {strides = array<i32>} : memref<4x8x8xbf16, #tpu.memory_space<vmem>>, vector<1x8x8xbf16>,
    %50 = vector.extract_strided_slice %5 {offsets = [0, 88], sizes = [8, 8], strides = [1, 1]} : vector<8x96xbf16> to vector<8x8xbf16>
    %c3_34 = arith.constant 3 : index
    %c0_35 = arith.constant 0 : index
    %c0_36 = arith.constant 0 : index
    %51 = vector.load %arg8[%c3_34, %c0_35, %c0_36] : memref<4x8x8xbf16, #tpu.memory_space<vmem>>, vector<1x8x8xbf16>
    %52 = vector.shape_cast %51 : vector<1x8x8xbf16> to vector<8x8xbf16>
    %53 = vector.shape_cast %50 : vector<8x8xbf16> to vector<1x8x8xbf16>
    tpu.vector_store %arg8[%c3_34, %c0_35, %c0_36], %53 {strides = array<i32>} : memref<4x8x8xbf16, #tpu.memory_space<vmem>>, vector<1x8x8xbf16>,
    %c0_37 = arith.constant 0 : index
    %c0_38 = arith.constant 0 : index
    %c0_39 = arith.constant 0 : index
    %54 = vector.load %arg6[%c0_37, %c0_38, %c0_39] : memref<4x8x8xbf16, #tpu.memory_space<vmem>>, vector<4x8x8xbf16>
    %c0_40 = arith.constant 0 : index
    %c0_41 = arith.constant 0 : index
    %c0_42 = arith.constant 0 : index
    %55 = vector.load %arg7[%c0_40, %c0_41, %c0_42] : memref<4x8x8xbf16, #tpu.memory_space<vmem>>, vector<4x8x8xbf16>
    %c0_43 = arith.constant 0 : index
    %c0_44 = arith.constant 0 : index
    %c0_45 = arith.constant 0 : index
    %56 = vector.load %arg8[%c0_43, %c0_44, %c0_45] : memref<4x8x8xbf16, #tpu.memory_space<vmem>>, vector<4x8x8xbf16>
    %cst_46 = arith.constant dense<0.000000e+00> : vector<4x8x8xf32>
    %57 = tpu.matmul %54, %55, %cst_46 {dimension_numbers = #tpu.dot_dimension_numbers<[2], [2], [1], [1], [0, 0, 0, 1, 1, 1], [0], [0]>} : vector<4x8x8xbf16>, vector<4x8x8xbf16>, vector<4x8x8xf32> -> vector<4x8x8xf32>
    %cst_47 = arith.constant dense<0xFF800000> : vector<4x8xf32>
    %58 = vector.multi_reduction <maximumf>, %57, %cst_47 [2] : vector<4x8x8xf32> to vector<4x8xf32>
    %59 = vector.shape_cast %58 : vector<4x8xf32> to vector<4x8x1xf32>
    %60 = vector.broadcast %59 : vector<4x8x1xf32> to vector<4x8x8xf32>
    %61 = arith.subf %57, %60 : vector<4x8x8xf32>
    %62 = math.exp %61 : vector<4x8x8xf32>
    %cst_48 = arith.constant dense<0.000000e+00> : vector<4x8xf32>
    %63 = vector.multi_reduction <add>, %62, %cst_48 [2] : vector<4x8x8xf32> to vector<4x8xf32>
    %64 = vector.shape_cast %63 : vector<4x8xf32> to vector<4x8x1xf32>
    %65 = tpu.reciprocal %64 {approx = true} : vector<4x8x1xf32> -> vector<4x8x1xf32>
    %66 = vector.broadcast %65 : vector<4x8x1xf32> to vector<4x8x8xf32>
    %67 = arith.mulf %62, %66 : vector<4x8x8xf32>
    %68 = arith.truncf %67 : vector<4x8x8xf32> to vector<4x8x8xbf16>
    %cst_49 = arith.constant dense<0.000000e+00> : vector<4x8x8xf32>
    %69 = tpu.matmul %68, %56, %cst_49 {dimension_numbers = #tpu.dot_dimension_numbers<[2], [1], [1], [2], [0, 0, 0, 1, 1, 2], [0], [0]>} : vector<4x8x8xbf16>, vector<4x8x8xbf16>, vector<4x8x8xf32> -> vector<4x8x8xf32>
    %70 = arith.truncf %69 : vector<4x8x8xf32> to vector<4x8x8xbf16>
    %71 = vector.extract_strided_slice %70 {offsets = [0, 0, 0], sizes = [1, 8, 8], strides = [1, 1, 1]} : vector<4x8x8xbf16> to vector<1x8x8xbf16>
    %72 = vector.shape_cast %71 : vector<1x8x8xbf16> to vector<8x8xbf16>
    %c0_50 = arith.constant 0 : index
    %c0_51 = arith.constant 0 : index
    %73 = vector.load %arg9[%c0_50, %c0_51] : memref<8x32xbf16, #tpu.memory_space<vmem>>, vector<8x8xbf16>
    tpu.vector_store %arg9[%c0_50, %c0_51], %72 {strides = array<i32>} : memref<8x32xbf16, #tpu.memory_space<vmem>>, vector<8x8xbf16>,
    %74 = vector.extract_strided_slice %70 {offsets = [1, 0, 0], sizes = [1, 8, 8], strides = [1, 1, 1]} : vector<4x8x8xbf16> to vector<1x8x8xbf16>
    %75 = vector.shape_cast %74 : vector<1x8x8xbf16> to vector<8x8xbf16>
    %c0_52 = arith.constant 0 : index
    %c8 = arith.constant 8 : index
    %76 = vector.load %arg9[%c0_52, %c8] : memref<8x32xbf16, #tpu.memory_space<vmem>>, vector<8x8xbf16>
    tpu.vector_store %arg9[%c0_52, %c8], %75 {strides = array<i32>} : memref<8x32xbf16, #tpu.memory_space<vmem>>, vector<8x8xbf16>,
    %77 = vector.extract_strided_slice %70 {offsets = [2, 0, 0], sizes = [1, 8, 8], strides = [1, 1, 1]} : vector<4x8x8xbf16> to vector<1x8x8xbf16>
    %78 = vector.shape_cast %77 : vector<1x8x8xbf16> to vector<8x8xbf16>
    %c0_53 = arith.constant 0 : index
    %c16 = arith.constant 16 : index
    %79 = vector.load %arg9[%c0_53, %c16] : memref<8x32xbf16, #tpu.memory_space<vmem>>, vector<8x8xbf16>
    tpu.vector_store %arg9[%c0_53, %c16], %78 {strides = array<i32>} : memref<8x32xbf16, #tpu.memory_space<vmem>>, vector<8x8xbf16>,
    %80 = vector.extract_strided_slice %70 {offsets = [3, 0, 0], sizes = [1, 8, 8], strides = [1, 1, 1]} : vector<4x8x8xbf16> to vector<1x8x8xbf16>
    %81 = vector.shape_cast %80 : vector<1x8x8xbf16> to vector<8x8xbf16>
    %c0_54 = arith.constant 0 : index
    %c24 = arith.constant 24 : index
    %82 = vector.load %arg9[%c0_54, %c24] : memref<8x32xbf16, #tpu.memory_space<vmem>>, vector<8x8xbf16>
    tpu.vector_store %arg9[%c0_54, %c24], %81 {strides = array<i32>} : memref<8x32xbf16, #tpu.memory_space<vmem>>, vector<8x8xbf16>,
    %c0_55 = arith.constant 0 : index
    %c0_56 = arith.constant 0 : index
    %83 = vector.load %arg9[%c0_55, %c0_56] : memref<8x32xbf16, #tpu.memory_space<vmem>>, vector<8x32xbf16>
    %c0_57 = arith.constant 0 : index
    %c0_58 = arith.constant 0 : index
    %84 = vector.load %arg3[%c0_57, %c0_58] : memref<32x32xbf16, #tpu.memory_space<vmem>>, vector<32x32xbf16>
    %cst_59 = arith.constant dense<0.000000e+00> : vector<8x32xf32>
    %85 = tpu.matmul %83, %84, %cst_59 {dimension_numbers = #tpu.dot_dimension_numbers<[1], [0], [0], [1], [0, 0, 1, 1], [], []>} : vector<8x32xbf16>, vector<32x32xbf16>, vector<8x32xf32> -> vector<8x32xf32>
    %c0_60 = arith.constant 0 : index
    %c0_61 = arith.constant 0 : index
    %86 = vector.load %arg4[%c0_60, %c0_61] : memref<1x32xf32, #tpu.memory_space<vmem>>, vector<1x32xf32>
    %87 = vector.broadcast %86 : vector<1x32xf32> to vector<8x32xf32>
    %88 = arith.addf %85, %87 : vector<8x32xf32>
    %c0_62 = arith.constant 0 : index
    %c0_63 = arith.constant 0 : index
    %c0_64 = arith.constant 0 : index
    %89 = vector.load %arg5[%c0_62, %c0_63, %c0_64] : memref<1x8x32xf32, #tpu.memory_space<vmem>>, vector<1x8x32xf32>
    %90 = vector.shape_cast %89 : vector<1x8x32xf32> to vector<8x32xf32>
    %91 = vector.shape_cast %88 : vector<8x32xf32> to vector<1x8x32xf32>
    tpu.vector_store %arg5[%c0_62, %c0_63, %c0_64], %91 {strides = array<i32>} : memref<1x8x32xf32, #tpu.memory_space<vmem>>, vector<1x8x32xf32>,
    return
  }
  func.func @transform_0(%arg0: i32) -> (i32, i32, i32) {
    %c0_i32 = arith.constant 0 : i32
    %c0_i32_0 = arith.constant 0 : i32
    %c0_i32_1 = arith.constant 0 : i32
    return %arg0, %c0_i32, %c0_i32_0 : i32, i32, i32
  }
  func.func @transform_1(%arg0: i32) -> (i32, i32) {
    %c0_i32 = arith.constant 0 : i32
    %c0_i32_0 = arith.constant 0 : i32
    %c0_i32_1 = arith.constant 0 : i32
    return %c0_i32, %c0_i32_0 : i32, i32
  }
  func.func @transform_2(%arg0: i32) -> (i32, i32) {
    %c0_i32 = arith.constant 0 : i32
    %c0_i32_0 = arith.constant 0 : i32
    %c0_i32_1 = arith.constant 0 : i32
    return %c0_i32, %c0_i32_0 : i32, i32
  }
  func.func @transform_3(%arg0: i32) -> (i32, i32) {
    %c0_i32 = arith.constant 0 : i32
    %c0_i32_0 = arith.constant 0 : i32
    %c0_i32_1 = arith.constant 0 : i32
    return %c0_i32, %c0_i32_0 : i32, i32
  }
  func.func @transform_4(%arg0: i32) -> (i32, i32, i32) {
    %c0_i32 = arith.constant 0 : i32
    %c0_i32_0 = arith.constant 0 : i32
    %c0_i32_1 = arith.constant 0 : i32
    return %arg0, %c0_i32, %c0_i32_0 : i32, i32, i32
  }
}

</mosaic_0001>

<bundles_post_ra>
// kernel: tpu_custom_call.1
= control target key start
LH: loop header
LB: loop body
LE: loop exit
PB: predicated region body
PF: predicated region fallthrough
CT: control target
= control target key end

     0   :  { %9 = vsyncpa [#allocation7], 0  ;;  %s1751_s0 = inlined_call_operand.hbm [shape: f32[2,8,32], index: 0, kind: input, shape index: {}]   ;;  %s1752_s1 = inlined_call_operand.hbm [shape: bf16[32,96], index: 1, kind: input, shape index: {}]   ;;  %s1753_s2 = inlined_call_operand.hbm [shape: bf16[32,32], index: 2, kind: input, shape index: {}]   ;;  %s1754_s3 = inlined_call_operand.vmem [shape: f32[1,32], index: 3, kind: input, shape index: {}]   ;;  %s1755_s4 = inlined_call_operand.hbm [shape: f32[2,8,32], index: 4, kind: output, shape index: {}]  }
   0x1   :  { %11 = vsyncpa [#allocation7 + $0x1], 0 }
   0x2   :  { %12 = vsyncpa [#allocation10], 0 }
   0x3   :  { %13 = vsyncpa [#allocation8], 0 }
   0x4   :  { %15 = vsyncpa [#allocation8 + $0x1], 0  ;;  %s1429_s15 = smov 0   ;;  %s1431_s16 = smov 0  }
   0x5   :  { %s1433_s17 = smov 0   ;;  %s1435_s18 = smov 0  }
   0x6 LB: > { %s1450_s19 = sadd.s32 4294967295, %s1380_s18   ;;  %s994_s20 = sadd.s32 4294967294, %s1380_s18   ;;  %s1380_s18 = sphi %s1435_s18, %s1775_s18   ;;  %s1376_s17 = sphi %s1433_s17, %s1774_s17   ;;  %s1372_s16 = sphi %s1431_s16, %s1773_s16   ;;  %s1368_s15 = sphi %s1429_s15, %s1772_s15  }
   0x7   : > { %p41_p0 = scmp.ne.s32.totalorder %s1372_s16, %s1368_s15  ;;  %p1756_p1 = scmp.eq.s32.totalorder %s1450_s19, 0 }
   0x8   : > { %p134_p3 = scmp.eq.s32.totalorder %s994_s20, 1  ;;  %p995_p5 = scmp.ge.s32.totalorder %s1380_s18, 1 }
   0x9   : > { %p1459_p4 = por %p1756_p1, %p41_p0  ;;  %p141_p7 = scmp.lt.s32.totalorder %s1380_s18, 3 }
   0xa   : > { %p1464_p6 = por %p134_p3, %p41_p0  ;;  %s1382_s24 = smov [#allocation9]  }
   0xb   : > { %s1759_s21 = scalar_select %p1459_p4, 1, 0 }
   0xc   : > { %s1760_s22 = scalar_select %p1464_p6, 1, 0 }
   0xd   : > { %p1469_p8 = pnand %p995_p5, %p141_p7  ;;  %s153_s25 = sshll.u32 %s1382_s24, 4  ;;  %s1473_s25 = int_to_ptr.vmem [resolvable:$true] %s153_s25 }
   0xe   : > { %s1383_s27 = smov [#allocation11]   ;;  %s1224_s5 = scalar_lea.hbm %s1752_s1, 256 }
   0xf   : > { %p1131_p9 = pneg %p1469_p8  ;;  %s166_s28 = sshll.u32 %s1383_s27, 4  ;;  %s1484_s28 = int_to_ptr.vmem [resolvable:$true] %s166_s28 }
  0x10   : > { %p1225_p12 = scmp.ne.s32.totalorder %s1752_s1, %s1224_s5  ;;  %p1231_p5 = scmp.lt.u32.totalorder %s1224_s5, %s1752_s1 }
  0x11   : > { %p1480_p11 = pnand %p1131_p9, %p1756_p1 }
  0x13   : > { %p1226_p13 = pneg %p1480_p11 }
  0x15   : > { %p1227_p0 = pnand %p1226_p13, %p1225_p12 }
  0x17   : > { %p1228_p3 = pneg %p1227_p0 }
  0x19   : > { %p1233_p7 = pnand %p1231_p5, %p1228_p3 }
  0x1b   : > { %1236 = shalt.err (!%p1233_p7)
}
  0x1c   : > { %s1237_s10 = scalar_lea.vmem %s1473_s25, 256  ;;  %p1245_p2 = scmp.lt.s32.totalorder %s1473_s25, %s1473_s25 }
  0x1d   : > { %p1238_p9 = scmp.ne.s32.totalorder %s1473_s25, %s1237_s10  ;;  %p1246_p12 = scmp.lt.s32.totalorder %s1237_s10, %s1237_s10 }
  0x1f   : > { %p1240_p10 = pnand %p1238_p9, %p1226_p13  ;;  %p1247_p0 = por %p1246_p12, %p1245_p2 }
  0x21   : > { %p1241_p1 = pneg %p1240_p10 }
  0x23   : > { %p1248_p6 = pnand %p1247_p0, %p1241_p1 }
  0x25   : > { %1251 = shalt.err (!%p1248_p6)
}
  0x26   : > { %s1384_s11 = smov 64   ;;  %s1385_s12 = smov 4  }
  0x27   : > { %1134 = dma.hbm_to_vmem [thread:$0]  (!%p1480_p11), %s1752_s1, 256, %s1473_s25, [#allocation10], %s1384_s11, %s1384_s11, %s1385_s12  }
  0x28   : > { %s1252_s27 = scalar_lea.hbm %s1753_s2, 256 }
  0x29   : > { %p1253_p2 = scmp.ne.s32.totalorder %s1753_s2, %s1252_s27  ;;  %p1259_p10 = scmp.lt.u32.totalorder %s1252_s27, %s1753_s2 }
  0x2b   : > { %p1255_p1 = pnand %p1253_p2, %p1226_p13 }
  0x2d   : > { %p1256_p6 = pneg %p1255_p1 }
  0x2f   : > { %p1261_p3 = pnand %p1259_p10, %p1256_p6 }
  0x31   : > { %1264 = shalt.err (!%p1261_p3)
}
  0x32   : > { %s1265_s25 = scalar_lea.vmem %s1484_s28, 256  ;;  %p1273_p12 = scmp.lt.s32.totalorder %s1484_s28, %s1484_s28 }
  0x33   : > { %p1266_p5 = scmp.ne.s32.totalorder %s1484_s28, %s1265_s25  ;;  %p1274_p0 = scmp.lt.s32.totalorder %s1265_s25, %s1265_s25 }
  0x35   : > { %p1268_p7 = pnand %p1266_p5, %p1226_p13  ;;  %p1275_p2 = por %p1274_p0, %p1273_p12 }
  0x37   : > { %p1269_p9 = pneg %p1268_p7 }
  0x39   : > { %p1276_p1 = pnand %p1275_p2, %p1269_p9 }
  0x3b   : > { %1279 = shalt.err (!%p1276_p1)
}
  0x3c   : > { %1137 = dma.hbm_to_vmem [thread:$0]  (!%p1480_p11), %s1753_s2, 256, %s1484_s28, [#allocation10], %s1384_s11, %s1384_s11, %s1385_s12  }
  0x3d   : > { %s1539_s9 = sadd.s32 1, %s1380_s18   ;;  %s28_s26 = sadd.s32 1, %s1376_s17 }
  0x3e   : > { %s25_s10 = ssub.s32 %s1380_s18, %s1539_s9  ;;  %p35_p13 = scmp.ne.s32.totalorder %s1376_s17, %s1372_s16 }
  0x3f   : > { %p26_p6 = scmp.eq.s32.totalorder %s25_s10, 0  ;;  %p36_p10 = scmp.eq.s32.totalorder %s1380_s18, 0 }
  0x40   : > { %p1763_p3 = scmp.eq.s32.totalorder %s1450_s19, 1  ;;  %p1148_p7 = scmp.lt.s32.totalorder %s1380_s18, 2 }
  0x41   : > { %s1555_s14 = scalar_select %p26_p6, %s1376_s17, %s28_s26  }
  0x42   : > { %p1549_p5 = por %p1763_p3, %p35_p13  ;;  %p37_p9 = por %p36_p10, %p35_p13 }
  0x43   : > { %s183_s20 = sand.u32 1, %s1376_s17   ;;  %s1000_s28 = sshll.u32 %s1380_s18, 7 }
  0x44   : > { %s1764_s13 = scalar_select %p1549_p5, 1, 0 }
  0x45   : > { %s999_s24 = sshll.u32 %s183_s20, 3  ;;  %s1562_s27 = scalar_lea.hbm %s1751_s0, %s1000_s28 }
  0x46   : > { %s187_s29 = scalar_lea.vmem [#allocation6], %s999_s24  ;;  %p1566_p11 = pnand %p1148_p7, %p37_p9 }
  0x47   : > { %s194_s30 = sshll.u32 %s187_s29, 4  ;;  %s184_s6 = scalar_lea.sflag [#allocation7], %s183_s20  ;;  %s1564_s30 = int_to_ptr.vmem [resolvable:$true] %s194_s30 }
  0x48   : > { %s1280_s25 = scalar_lea.hbm %s1562_s27, 128  ;;  %p1282_p0 = pneg %p1566_p11 }
  0x49   : > { %p1281_p12 = scmp.ne.s32.totalorder %s1562_s27, %s1280_s25  ;;  %s1285_s26 = scalar_lea.hbm %s1751_s0, 256 }
  0x4a   : > { %p1286_p13 = scmp.lt.u32.totalorder %s1562_s27, %s1751_s0  ;;  %p1287_p6 = scmp.lt.u32.totalorder %s1285_s26, %s1280_s25 }
  0x4b   : > { %p1283_p2 = pnand %p1282_p0, %p1281_p12  ;;  %p1289_p3 = scmp.lt.u32.totalorder %s1280_s25, %s1562_s27 }
  0x4c   : > { %p1288_p10 = por %p1287_p6, %p1286_p13 }
  0x4d   : > { %p1284_p1 = pneg %p1283_p2 }
  0x4e   : > { %p1290_p7 = por %p1289_p3, %p1288_p10 }
  0x50   : > { %p1291_p9 = pnand %p1290_p7, %p1284_p1 }
  0x52   : > { %1294 = shalt.err (!%p1291_p9)
}
  0x53   : > { %s1295_s20 = scalar_lea.vmem %s1564_s30, 128  ;;  %s1386_s28 = smov [#allocation6]  }
  0x54   : > { %p1296_p12 = scmp.ne.s32.totalorder %s1564_s30, %s1295_s20  ;;  %s1300_s11 = sshll.u32 %s1386_s28, 4  ;;  %s1301_s11 = int_to_ptr.vmem [resolvable:$false] %s1300_s11 }
  0x55   : > { %s1302_s12 = scalar_lea.vmem %s1301_s11, 256  ;;  %p1303_p4 = scmp.lt.s32.totalorder %s1564_s30, %s1301_s11 }
  0x56   : > { %p1298_p2 = pnand %p1296_p12, %p1282_p0  ;;  %p1304_p13 = scmp.lt.s32.totalorder %s1302_s12, %s1295_s20 }
  0x58   : > { %p1299_p5 = pneg %p1298_p2  ;;  %p1305_p6 = por %p1304_p13, %p1303_p4 }
  0x5a   : > { %p1306_p10 = pnand %p1305_p6, %p1299_p5 }
  0x5c   : > { %1309 = shalt.err (!%p1306_p10)
}
  0x5d   : > { %1141 = dma.hbm_to_vmem [thread:$0]  (!%p1566_p11), %s1562_s27, 128, %s1564_s30, %s184_s6  }
  0x5e   : > { %203 = sbr.rel (%p1469_p8) target bundleno = 1567 (0x61f), region = 36  ;;  %s1598_s29 = sand.u32 (!%p1469_p8), 1, %s1372_s16  }
  0x5f   : > { %s1002_s25 = sshll.u32 (!%p1469_p8), %s1598_s29, 3  ;;  %s206_s7 = scalar_lea.sflag (!%p1469_p8), [#allocation7], %s1598_s29 }
  0x60   : > { %s209_s8 = scalar_lea.vmem (!%p1469_p8), [#allocation6], %s1002_s25  ;;  %p1766_p4 = scmp.ne.s32.totalorder (!%p1469_p8), %s1759_s21, 0 }
  0x65   : > { %1355 = dma.done.wait (%p1766_p4), %s206_s7, 128  }
  0x66   : > { %1357 = vsyncadd (%p1766_p4), %s206_s7, 4294967168  ;;  %p1767_p5 = scmp.eq.s32.totalorder %s1450_s19, 0 }
  0x68   : > { %1359 = dma.done.wait (%p1767_p5), [#allocation10], 512   ;;  %p1768_p8 = pmov %p1767_p5 }
  0x69   : > { %v1387_v0 = vmov 0.0   ;;  %vm1388_vm0 = vmmov 0   ;;  %v1204_v1 = vld [vmem:[#allocation9] sm:$0xff]   ;;  %v1205_v2 = vld [vmem:[#allocation9 + $0x8] sm:$0xff]   ;;  %v243_v3 = vld [vmem:[%s209_s8] sm:$0xff]  ;;  %vm261_vm1 = vcmask 261120  }
  0x6a   : > { %1361 = vsyncadd (%p1768_p8), [#allocation10], 4294966784  ;;  %1055 = vmatprep.subr.bf16.mxu0 %v1387_v0  ;;  %1059 = vmatprep.mubr.msk.bf16.mxu0 %vm1388_vm0, %v1387_v0  ;;  %v244_v4 = vpack.c.bf16 %v243_v3, %v243_v3  ;;  %vm306_vm2 = vcmask 60416   ;;  %s1389_s21 = smov 80   ;;  %s1390_s23 = smov 96   ;;  %vm376_vm3 = vcmask 64512  }
  0x6b   : > { %1063 = vmatprep.subr.bf16.mxu1 %v1387_v0  ;;  %1065 = vmatprep.mubr.msk.bf16.mxu1 %vm1388_vm0, %v1387_v0  ;;  %s1391_s27 = smov 120   ;;  %s1392_s30 = smov 88   ;;  %vm612_vm4 = vcmask 1043456   ;;  %vm805_vm5 = vcmask 126016   ;;  %vm813_vm6 = vcmask 191616   ;;  %vm821_vm7 = vcmask 257216  }
  0x6c   : > { %1056 = vmatpush3.bf16.msra.mxu0 %v1204_v1  ;;  %s1393_s5 = smov 112   ;;  %s1394_s6 = smov 72  }
  0x6d   : > { %1057 = vmatprep.subr.bf16.mxu0 %v1387_v0  ;;  %s1395_s26 = smov 104   ;;  %s1396_s10 = smov 56  }
  0x6e   : > { %s1397_s24 = smov 64   ;;  %s1398_s20 = smov 48  }
  0x6f   : > { %s1399_s28 = smov 40   ;;  %s1400_s11 = smov 8  }
  0x70   : > { %1058 = vmatpush3.bf16.msra.mxu0 %v1205_v2  ;;  %s1401_s12 = smov 24   ;;  %s1402_s7 = smov 16  }
  0x71   : > { %1069 = vmatprep.subr.bf16.mxu0 %v1387_v0  ;;  %p1769_p0 = scmp.ne.s32.totalorder %s1764_s13, 0 }
  0x73   : > { %1060 = vmatmul.mubr.msk.bf16.vlgmr.msra.gmra.mrb[0].mxu0 %vm261_vm1, %v244_v4 }
  0x74   : > { %1071 = vmatprep.mubr.msk.bf16.mxu0 %vm1388_vm0, %v1387_v0 }
 0x146   : > { %v299_v5 = vpop.f32.mrb[0].mxu0 }
 0x147   : > { %v1623_v6 = vpack.c.bf16 %v299_v5, %v299_v5  ;;  %v1061_v7 = vpop.f32.mrb[1].mxu0 }
 0x148   : > { %v302_v8 = vpop.f32.mrb[2].mxu0 }
 0x149   : > { %339 = vrot.lane.b32.xlu1 %v1623_v6, %s1389_s21  ;;  %311 = vrot.lane.b32.xlu0 %v1623_v6, %s1390_s23  ;;  %v1062_v9 = vpop.f32.mrb[3].mxu0  ;;  %307 = vst.msk [vmem:[#allocation2] sm:$0xf] %vm306_vm2, %v1623_v6  ;;  %s1026_s23 = sshll.u32 %s1450_s19, 7  ;;  %s892_s19 = scalar_lea.sflag [#allocation8], %s1598_s29 }
 0x14d   : > { %319 = vrot.lane.b32.xlu1 %v1623_v6, %s1391_s27  ;;  %324 = vrot.lane.b32.xlu0 %v1623_v6, %s1392_s30  ;;  %s241_s27 = scalar_lea.vmem [#allocation12], %s1002_s25 }
 0x14e   : > { %s905_s30 = sshll.u32 %s241_s27, 4  ;;  %s1708_s30 = int_to_ptr.vmem [resolvable:$true] %s905_s30 }
 0x14f   : > { %s1310_s25 = scalar_lea.vmem %s1708_s30, 128 }
 0x150   : > { %v364_v22 = vld [vmem:[#allocation2] sm:$0xf]  ;;  %p1311_p11 = scmp.ne.s32.totalorder %s1708_s30, %s1310_s25 }
 0x151   : > { %334 = vrot.lane.b32.xlu1 %v1623_v6, %s1393_s5  ;;  %354 = vrot.lane.b32.xlu0 %v1623_v6, %s1394_s6 }
 0x152   : > { %p1312_p1 = pnand %p1311_p11, %p1769_p0 }
 0x154   : > { %p1313_p3 = pneg %p1312_p1 }
 0x155   : > { %349 = vrot.lane.b32.xlu0 %v1623_v6, %s1395_s26  ;;  %s1706_s26 = scalar_lea.hbm %s1755_s4, %s1026_s23 }
 0x1bb   : > { %v340_v10 = vpop.permute.xlu1 %339  ;;  %v312_v11 = vpop.permute.xlu0 %311 }
 0x1bc   : > { %343 = vst.msk [vmem:[#allocation3 + $0x8] sm:$0xf] %vm306_vm2, %v340_v10  ;;  %314 = vst.msk [vmem:[#allocation3] sm:$0xf] %vm306_vm2, %v312_v11 }
 0x1bf   : > { %v320_v12 = vpop.permute.xlu1 %319  ;;  %v325_v13 = vpop.permute.xlu0 %324 }
 0x1c0   : > { %323 = vst.msk [vmem:[#allocation2 + $0x4] sm:$0xf] %vm306_vm2, %v320_v12  ;;  %328 = vst.msk [vmem:[#allocation3 + $0x4] sm:$0xf] %vm306_vm2, %v325_v13 }
 0x1c3   : > { %v335_v14 = vpop.permute.xlu1 %334  ;;  %v355_v15 = vpop.permute.xlu0 %354  ;;  %v368_v16 = vld [vmem:[#allocation3] sm:$0xf]  ;;  %v370_v21 = vld [vmem:[#allocation3 + $0x8] sm:$0xf] }
 0x1c4   : > { %338 = vst.msk [vmem:[#allocation2 + $0x8] sm:$0xf] %vm306_vm2, %v335_v14  ;;  %358 = vst.msk [vmem:[#allocation3 + $0xc] sm:$0xf] %vm306_vm2, %v355_v15  ;;  %v381_v17 = vsel %vm376_vm3, %v368_v16, 0  ;;  %v473_v23 = vsel %vm376_vm3, %v370_v21, 0 }
 0x1c5   : > { %1064 = vmatpush3.bf16.xpose.msra.mxu1 %v381_v17 }
 0x1c6   : > { %1075 = vmatprep.subr.bf16.mxu1 %v1387_v0 }
 0x1c7   : > { %v350_v18 = vpop.permute.xlu0 %349  ;;  %v369_v19 = vld [vmem:[#allocation3 + $0x4] sm:$0xf]  ;;  %v365_v25 = vld [vmem:[#allocation2 + $0x4] sm:$0xf] }
 0x1c8   : > { %353 = vst.msk [vmem:[#allocation2 + $0xc] sm:$0xf] %vm306_vm2, %v350_v18  ;;  %v427_v20 = vsel %vm376_vm3, %v369_v19, 0 }
 0x1c9   : > { %1070 = vmatpush3.bf16.xpose.msra.mxu0 %v427_v20 }
 0x1ca   : > { %1081 = vmatprep.subr.bf16.mxu0 %v1387_v0 }
 0x1cb   : > { %v371_v24 = vld [vmem:[#allocation3 + $0xc] sm:$0xf]  ;;  %v366_v27 = vld [vmem:[#allocation2 + $0x8] sm:$0xf] }
 0x1cc   : > { %1066 = vmatmul.mubr.msk.bf16.vlgmr.msra.gmra.mrb[0].mxu1 %vm376_vm3, %v364_v22  ;;  %v519_v26 = vsel %vm376_vm3, %v371_v24, 0 }
 0x1cd   : > { %1076 = vmatpush3.bf16.xpose.msra.mxu1 %v473_v23  ;;  %1077 = vmatprep.mubr.msk.bf16.mxu1 %vm1388_vm0, %v1387_v0 }
 0x1ce   : > { %1087 = vmatprep.subr.bf16.mxu1 %v1387_v0 }
 0x1cf   : > { %v367_v28 = vld [vmem:[#allocation2 + $0xc] sm:$0xf] }
 0x1d0   : > { %1072 = vmatmul.mubr.msk.bf16.vlgmr.msra.gmra.mrb[4].mxu0 %vm376_vm3, %v365_v25 }
 0x1d1   : > { %1082 = vmatpush3.bf16.xpose.msra.mxu0 %v519_v26  ;;  %1083 = vmatprep.mubr.msk.bf16.mxu0 %vm1388_vm0, %v1387_v0 }
 0x1d2   : > { %1093 = vmatprep.subr.bf16.mxu0 %v1387_v0 }
 0x1d4   : > { %1078 = vmatmul.mubr.msk.bf16.vlgmr.msra.gmra.mrb[4].mxu1 %vm376_vm3, %v366_v27 }
 0x1d5   : > { %1089 = vmatprep.mubr.msk.bf16.mxu1 %vm1388_vm0, %v1387_v0 }
 0x1d8   : > { %1084 = vmatmul.mubr.msk.bf16.vlgmr.msra.gmra.mrb[8].mxu0 %vm376_vm3, %v367_v28 }
 0x1d9   : > { %1095 = vmatprep.mubr.msk.bf16.mxu0 %vm1388_vm0, %v1387_v0 }
 0x29f   : > { %v417_v29 = vpop.f32.mrb[0].mxu1 }
 0x2a0   : > { %v1067_v30 = vpop.f32.mrb[1].mxu1  ;;  %v561_v31 = vsel %vm376_vm3, %v417_v29, -inf }
 0x2a1   : > { %562 = vmax.xlane.f32.xlu1 %v561_v31  ;;  %v420_v32 = vpop.f32.mrb[2].mxu1 }
 0x2a2   : > { %v1068_v33 = vpop.f32.mrb[3].mxu1 }
 0x2a3   : > { %v463_v34 = vpop.f32.mrb[4].mxu0 }
 0x2a4   : > { %v1073_v35 = vpop.f32.mrb[5].mxu0  ;;  %v564_v36 = vsel %vm376_vm3, %v463_v34, -inf }
 0x2a5   : > { %565 = vmax.xlane.f32.xlu0 %v564_v36  ;;  %v466_v37 = vpop.f32.mrb[6].mxu0 }
 0x2a6   : > { %v1074_v38 = vpop.f32.mrb[7].mxu0 }
 0x2a7   : > { %v509_v39 = vpop.f32.mrb[4].mxu1 }
 0x2a8   : > { %v1079_v40 = vpop.f32.mrb[5].mxu1  ;;  %v567_v41 = vsel %vm376_vm3, %v509_v39, -inf }
 0x2a9   : > { %v512_v42 = vpop.f32.mrb[6].mxu1  ;;  %568 = vmax.xlane.f32.xlu0 %v567_v41 }
 0x2aa   : > { %v1080_v43 = vpop.f32.mrb[7].mxu1 }
 0x2ab   : > { %v555_v44 = vpop.f32.mrb[8].mxu0  ;;  %v1207_v43 = vld [vmem:[#allocation11 + $0x8] sm:$0xff]  }
 0x2ac   : > { %v1085_v45 = vpop.f32.mrb[9].mxu0  ;;  %v570_v46 = vsel %vm376_vm3, %v555_v44, -inf }
 0x2ad   : > { %571 = vmax.xlane.f32.xlu1 %v570_v46  ;;  %v558_v47 = vpop.f32.mrb[10].mxu0 }
 0x2ae   : > { %v1086_v48 = vpop.f32.mrb[11].mxu0 }
 0x2be   : > { %329 = vrot.lane.b32.xlu1 %v1623_v6, %s1396_s10  ;;  %s1403_s10 = smov [#allocation12]  }
 0x2bf   : > { %315 = vrot.lane.b32.xlu0 %v1623_v6, %s1397_s24  ;;  %s1314_s24 = sshll.u32 %s1403_s10, 4  ;;  %s1315_s24 = int_to_ptr.vmem [resolvable:$false] %s1314_s24 }
 0x2c0   : > { %p1317_p7 = scmp.lt.s32.totalorder %s1708_s30, %s1315_s24 }
 0x32e   : > { %v563_v49 = vpop.xlane.xlu1 %562 }
 0x32f   : > { %v573_v50 = vsub.f32 %v417_v29, %v563_v49 }
 0x331   : > { %v577_v51 = vmul.f32 1.442695, %v573_v50 }
 0x332   : > { %v566_v52 = vpop.xlane.xlu0 %565 }
 0x333   : > { %1208 = vpow2.f32 %v577_v51  ;;  %v574_v53 = vsub.f32 %v463_v34, %v566_v52 }
 0x335   : > { %v579_v54 = vmul.f32 1.442695, %v574_v53 }
 0x336   : > { %v569_v55 = vpop.xlane.xlu0 %568 }
 0x337   : > { %1210 = vpow2.f32 %v579_v54  ;;  %v575_v56 = vsub.f32 %v509_v39, %v569_v55  ;;  %v1206_v39 = vld [vmem:[#allocation11] sm:$0xff]  }
 0x339   : > { %v581_v57 = vmul.f32 1.442695, %v575_v56 }
 0x33a   : > { %v316_v58 = vpop.permute.xlu0 %315  ;;  %v572_v59 = vpop.xlane.xlu1 %571 }
 0x33b   : > { %1212 = vpow2.f32 %v581_v57  ;;  %318 = vst.msk [vmem:[#allocation4] sm:$0xf] %vm306_vm2, %v316_v58  ;;  %v576_v60 = vsub.f32 %v555_v44, %v572_v59  ;;  %v1021_v59 = vld [vmem:[%s1754_s3] ss:$0 sm:$0xff] }
 0x33d   : > { %v1209_v61 = vpop.eup %1208  ;;  %v583_v62 = vmul.f32 1.442695, %v576_v60 }
 0x33e   : > { %v330_v63 = vpop.permute.xlu1 %329  ;;  %v585_v1 = vsel %vm376_vm3, %v1209_v61, 0.0 }
 0x33f   : > { %1214 = vpow2.f32 %v583_v62  ;;  %333 = vst.msk [vmem:[#allocation4 + $0x4] sm:$0xf] %vm306_vm2, %v330_v63  ;;  %586 = vadd.xlane.f32.xlu0 %v585_v1 }
 0x341   : > { %v1211_v2 = vpop.eup %1210 }
 0x342   : > { %v588_v3 = vsel %vm376_vm3, %v1211_v2, 0.0  ;;  %v372_v4 = vld [vmem:[#allocation4] sm:$0xf] }
 0x343   : > { %589 = vadd.xlane.f32.xlu1 %v588_v3  ;;  %v614_v5 = vsel %vm612_vm4, %v372_v4, 0 }
 0x344   : > { %1088 = vmatpush3.bf16.msra.mxu1 %v614_v5 }
 0x345   : > { %v1213_v7 = vpop.eup %1212  ;;  %1099 = vmatprep.subr.bf16.mxu1 %v1387_v0 }
 0x346   : > { %v591_v8 = vsel %vm376_vm3, %v1213_v7, 0.0  ;;  %v373_v9 = vld [vmem:[#allocation4 + $0x4] sm:$0xf] }
 0x347   : > { %592 = vadd.xlane.f32.xlu0 %v591_v8  ;;  %v660_v10 = vsel %vm612_vm4, %v373_v9, 0 }
 0x348   : > { %1094 = vmatpush3.bf16.msra.mxu0 %v660_v10 }
 0x349   : > { %v1215_v11 = vpop.eup %1214  ;;  %1105 = vmatprep.subr.bf16.mxu0 %v1387_v0 }
 0x34a   : > { %v594_v12 = vsel %vm376_vm3, %v1215_v11, 0.0 }
 0x34b   : > { %595 = vadd.xlane.f32.xlu1 %v594_v12 }
 0x35c   : > { %344 = vrot.lane.b32.xlu1 %v1623_v6, %s1398_s20  ;;  %s1316_s20 = scalar_lea.vmem %s1315_s24, 256 }
 0x35d   : > { %359 = vrot.lane.b32.xlu0 %v1623_v6, %s1399_s28  ;;  %p1318_p9 = scmp.lt.s32.totalorder %s1316_s20, %s1310_s25 }
 0x35f   : > { %p1319_p12 = por %p1318_p9, %p1317_p7 }
 0x361   : > { %p1320_p2 = pnand %p1319_p12, %p1313_p3 }
 0x3cc   : > { %v587_v13 = vpop.xlane.xlu0 %586 }
 0x3cd   : > { %1216 = vrcp.f32 %v587_v13 }
 0x3d0   : > { %v590_v14 = vpop.xlane.xlu1 %589 }
 0x3d1   : > { %1218 = vrcp.f32 %v590_v14 }
 0x3d4   : > { %v593_v15 = vpop.xlane.xlu0 %592 }
 0x3d5   : > { %1220 = vrcp.f32 %v593_v15 }
 0x3d7   : > { %v1217_v16 = vpop.eup %1216 }
 0x3d8   : > { %v601_v17 = vmul.f32 %v1217_v16, %v1209_v61  ;;  %v360_v18 = vpop.permute.xlu0 %359  ;;  %v596_v19 = vpop.xlane.xlu1 %595 }
 0x3d9   : > { %363 = vst.msk [vmem:[#allocation4 + $0xc] sm:$0xf] %vm306_vm2, %v360_v18  ;;  %1222 = vrcp.f32 %v596_v19 }
 0x3da   : > { %v605_v20 = vpack.c.bf16 %v601_v17, %v601_v17 }
 0x3db   : > { %v1219_v21 = vpop.eup %1218 }
 0x3dc   : > { %v602_v22 = vmul.f32 %v1219_v21, %v1211_v2  ;;  %1090 = vmatmul.mubr.msk.bf16.vlgmr.msra.gmra.mrb[8].mxu1 %vm376_vm3, %v605_v20  ;;  %v345_v23 = vpop.permute.xlu1 %344 }
 0x3dd   : > { %348 = vst.msk [vmem:[#allocation4 + $0x8] sm:$0xf] %vm306_vm2, %v345_v23  ;;  %1101 = vmatprep.mubr.msk.bf16.mxu1 %vm1388_vm0, %v1387_v0 }
 0x3de   : > { %v606_v6 = vpack.c.bf16 %v602_v22, %v602_v22 }
 0x3df   : > { %v1221_v24 = vpop.eup %1220 }
 0x3e0   : > { %1096 = vmatmul.mubr.msk.bf16.vlgmr.msra.gmra.mrb[12].mxu0 %vm376_vm3, %v606_v6  ;;  %v375_v25 = vld [vmem:[#allocation4 + $0xc] sm:$0xf]  ;;  %v603_v28 = vmul.f32 %v1221_v24, %v1213_v7 }
 0x3e1   : > { %v752_v26 = vsel %vm612_vm4, %v375_v25, 0  ;;  %1107 = vmatprep.mubr.msk.bf16.mxu0 %vm1388_vm0, %v1387_v0 }
 0x3e2   : > { %1106 = vmatpush3.bf16.msra.mxu0 %v752_v26  ;;  %v607_v33 = vpack.c.bf16 %v603_v28, %v603_v28 }
 0x3e3   : > { %v1223_v27 = vpop.eup %1222 }
 0x3e4   : > { %v604_v29 = vmul.f32 %v1223_v27, %v1215_v11  ;;  %v374_v30 = vld [vmem:[#allocation4 + $0x8] sm:$0xf] }
 0x3e5   : > { %v706_v31 = vsel %vm612_vm4, %v374_v30, 0 }
 0x3e6   : > { %1100 = vmatpush3.bf16.msra.mxu1 %v706_v31  ;;  %v608_v32 = vpack.c.bf16 %v604_v29, %v604_v29 }
 0x3e7   : > { %1111 = vmatprep.subr.bf16.mxu1 %v1387_v0 }
 0x3e8   : > { %1108 = vmatmul.mubr.msk.bf16.vlgmr.msra.gmra.mrb[16].mxu0 %vm376_vm3, %v608_v32 }
 0x3e9   : > { %1102 = vmatmul.mubr.msk.bf16.vlgmr.msra.gmra.mrb[12].mxu1 %vm376_vm3, %v607_v33 }
 0x3ea   : > { %1115 = vmatprep.mubr.msk.bf16.mxu1 %vm1388_vm0, %v1387_v0  ;;  %1112 = vmatpush3.bf16.msra.mxu1 %v1206_v39 }
 0x3eb   : > { %1113 = vmatprep.subr.bf16.mxu1 %v1387_v0 }
 0x3ee   : > { %1114 = vmatpush3.bf16.msra.mxu1 %v1207_v43 }
 0x4af   : > { %v650_v34 = vpop.f32.mrb[8].mxu1 }
 0x4b0   : > { %v794_v35 = vpack.c.bf16 %v650_v34, %v650_v34  ;;  %v1091_v36 = vpop.f32.mrb[9].mxu1 }
 0x4b1   : > { %v653_v37 = vpop.f32.mrb[10].mxu1 }
 0x4b2   : > { %798 = vst.msk [vmem:[#allocation5] sm:$0xf] %vm306_vm2, %v794_v35  ;;  %v1092_v38 = vpop.f32.mrb[11].mxu1 }
 0x4b3   : > { %v696_v40 = vpop.f32.mrb[12].mxu0 }
 0x4b4   : > { %v1030_v41 = vpack.c.bf16 %v696_v40, %v696_v40  ;;  %v1097_v42 = vpop.f32.mrb[13].mxu0 }
 0x4b5   : > { %v699_v44 = vpop.f32.mrb[14].mxu0 }
 0x4b6   : > { %802 = vrot.lane.b32.xlu1 %v1030_v41, %s1400_s11  ;;  %v1098_v45 = vpop.f32.mrb[15].mxu0 }
 0x4bb   : > { %v788_v46 = vpop.f32.mrb[16].mxu0 }
 0x4bc   : > { %v1032_v47 = vpack.c.bf16 %v788_v46, %v788_v46  ;;  %v742_v48 = vpop.f32.mrb[12].mxu1  ;;  %v1109_v49 = vpop.f32.mrb[17].mxu0 }
 0x4bd   : > { %v1031_v50 = vpack.c.bf16 %v742_v48, %v742_v48  ;;  %v1103_v51 = vpop.f32.mrb[13].mxu1  ;;  %v791_v52 = vpop.f32.mrb[18].mxu0 }
 0x4be   : > { %v745_v53 = vpop.f32.mrb[14].mxu1  ;;  %818 = vrot.lane.b32.xlu1 %v1032_v47, %s1401_s12  ;;  %v1110_v54 = vpop.f32.mrb[19].mxu0 }
 0x4bf   : > { %810 = vrot.lane.b32.xlu0 %v1031_v50, %s1402_s7  ;;  %v1104_v0 = vpop.f32.mrb[15].mxu1 }
 0x528   : > { %v803_v55 = vpop.permute.xlu1 %802 }
 0x529   : > { %806 = vst.msk [vmem:[#allocation5] sm:$0xf] %vm805_vm5, %v803_v55 }
 0x530   : > { %v819_v57 = vpop.permute.xlu1 %818 }
 0x531   : > { %v811_v56 = vpop.permute.xlu0 %810 }
 0x532   : > { %814 = vst.msk [vmem:[#allocation5] sm:$0xf] %vm813_vm6, %v811_v56 }
 0x533   : > { %822 = vst.msk [vmem:[#allocation5] sm:$0xf] %vm821_vm7, %v819_v57 }
 0x53a   : > { %v823_v58 = vld [vmem:[#allocation5] sm:$0xf] }
 0x53b   : > { %1116 = vmatmul.mubr.msk.bf16.vlgmr.msra.gmra.mrb[16].mxu1 %vm261_vm1, %v823_v58 }
 0x60e   : > { %v884_v60 = vpop.f32.mrb[16].mxu1 }
 0x60f   : > { %v885_v61 = vadd.f32 %v1021_v59, %v884_v60  ;;  %v1117_v62 = vpop.f32.mrb[17].mxu1 }
 0x610   : > { %v887_v63 = vpop.f32.mrb[18].mxu1 }
 0x611   : > { %v1118_v1 = vpop.f32.mrb[19].mxu1  ;;  %890 = vst.msk [vmem:[%s241_s27] sm:$0xff] %vm261_vm1, %v885_v61 }
 0x612   : > { %1323 = shalt.err (!%p1320_p2)
}
 0x613   : > { %s1324_s29 = scalar_lea.hbm %s1706_s26, 128  ;;  %s1328_s12 = scalar_lea.hbm %s1755_s4, 256 }
 0x614   : > { %p1325_p13 = scmp.ne.s32.totalorder %s1706_s26, %s1324_s29  ;;  %p1329_p4 = scmp.lt.u32.totalorder %s1706_s26, %s1755_s4 }
 0x615   : > { %p1330_p5 = scmp.lt.u32.totalorder %s1328_s12, %s1324_s29  ;;  %p1332_p11 = scmp.lt.u32.totalorder %s1324_s29, %s1706_s26 }
 0x616   : > { %p1326_p6 = pnand %p1325_p13, %p1769_p0 }
 0x617   : > { %p1331_p8 = por %p1330_p5, %p1329_p4 }
 0x618   : > { %p1327_p10 = pneg %p1326_p6 }
 0x619   : > { %p1333_p1 = por %p1332_p11, %p1331_p8 }
 0x61b   : > { %p1334_p3 = pnand %p1333_p1, %p1327_p10 }
 0x61d   : > { %1337 = shalt.err (!%p1334_p3)
}
 0x61e   : > { %1129 = dma.vmem_to_hbm [thread:$0]  (%p1769_p0), %s1708_s30, 128, %s1706_s26, %s892_s19  }
 0x61f PF: > { %s917_s21 = sand.u32 1, %s1368_s15   ;;  %p1770_p7 = scmp.ne.s32.totalorder %s1760_s22, 0 }
 0x620   : > { %p1771_p9 = scmp.ge.s32.totalorder %s1380_s18, 2  ;;  %s918_s23 = scalar_lea.sflag [#allocation8], %s917_s21 }
 0x622   : > { %p1143_p12 = pnand %p1771_p9, %p1770_p7 }
 0x624   : > { %1363 = dma.done.wait (!%p1143_p12), %s918_s23, 128  }
 0x625   : > { %1365 = vsyncadd (!%p1143_p12), %s918_s23, 4294967168  ;;  %p18_p2 = scmp.ge.s32.totalorder %s1539_s9, 4   ;;  %s1772_s15 = smov %s1372_s16 }
 0x626   : > { %s1773_s16 = smov %s1376_s17  ;;  %s1774_s17 = smov %s1555_s14 }
 0x627   : > { %s1775_s18 = smov %s1539_s9  ;;  %20 = sbr.rel (!%p18_p2) target bundleno = 6 (0x6), region = 98 }
 0x62e   :  { %923 = vsyncpa [#allocation7], 1 }
 0x62f   :  { %925 = vsyncpa [#allocation7 + $0x1], 1 }
 0x630   :  { %926 = vsyncpa [#allocation10], 1 }
 0x631   :  { %927 = vsyncpa [#allocation8], 1 }
 0x632   :  { %929 = vsyncpa [#allocation8 + $0x1], 1 }

</bundles_post_ra>
